<compile_context>
chip_gen: v6e
topology: v6e:2x2x1
jax: 0.10.0
libtpu: 0.0.40
codegen_flags: <defaults>
</compile_context>

<pallas_src>
import functools

import jax
import jax.numpy as jnp
from jax import lax
from jax.experimental import pallas as pl
from jax.experimental.pallas import tpu as pltpu


def _round_up(x, m):
    return (x + m - 1) // m * m


def _choose_tiling(B, J, has_vis, want_masked):
    """Pick (tb, gb) for the batch-row grid (pure Python, trace-time)."""
    lanes_3j = _round_up(3 * J, 128)
    lanes_j = _round_up(max(J, 1), 128)
    # Conservative double-buffered f32 VMEM bytes per batch row.
    per_row = 4 * 2 * (2 * lanes_3j
                       + (lanes_j if has_vis else 0)
                       + (lanes_j if want_masked else 0) + 2)
    tb_max = max(8, min(1024, (8 << 20) // per_row))

    gb = pl.cdiv(B, tb_max)
    if B >= 64:
        gb = max(gb, 2)          # let v7x's two TensorCores each take >=1 step
    tb = _round_up(pl.cdiv(B, gb), 8)
    if tb >= B:
        return B, 1              # single full-batch block (block dims == array dims)
    return tb, pl.cdiv(B, tb)


def _make_kernel(J, has_vis, want_masked):
    three_j = 3 * J

    def kernel(*refs):
        it = iter(refs)
        j_ref = next(it)
        g_ref = next(it)
        v_ref = next(it) if has_vis else None
        masked_ref = next(it) if want_masked else None
        part_ref = next(it)

        # (tb, 3J) squared coordinate differences, computed in f32.
        d = j_ref[...].astype(jnp.float32) - g_ref[...].astype(jnp.float32)
        dd = d * d

        # Constant 0/1 selection matrix S[3j+c, j] = 1, built from iotas.
        r = lax.broadcasted_iota(jnp.int32, (three_j, J), 0)
        c = lax.broadcasted_iota(jnp.int32, (three_j, J), 1)
        off = r - c * 3
        sel = jnp.logical_and(off >= 0, off < 3).astype(jnp.float32)

        # Per-joint squared sums on the (idle) MXU.  Two-pass hi/lo split keeps
        # the result f32-accurate even if the matmul path rounds inputs to bf16.
        dd_hi = dd.astype(jnp.bfloat16).astype(jnp.float32)
        dd_lo = dd - dd_hi
        ss = (jnp.dot(dd_hi, sel, preferred_element_type=jnp.float32)
              + jnp.dot(dd_lo, sel, preferred_element_type=jnp.float32))
        l2 = jnp.sqrt(ss)                                   # (tb, J)

        if has_vis:
            vis = v_ref[...].astype(jnp.float32)
            masked = l2 * vis
        else:
            masked = l2

        if want_masked:
            masked_ref[...] = masked.astype(masked_ref.dtype)

        rsum = jnp.sum(masked, axis=1, keepdims=True)       # (tb, 1)
        if has_vis:
            # clamp where(n<1, 1, n) == maximum(n, 1) for nonnegative vis.
            nval = jnp.maximum(jnp.sum(vis, axis=1, keepdims=True), 1.0)
            part_ref[:, 0:1] = rsum
            part_ref[:, 1:2] = nval
        else:
            part_ref[...] = rsum

    return kernel


@functools.partial(jax.jit, static_argnames=("output_batch_mpjpe",))
def joint_mpjpe_loss(joint_3d, gt, joints_vis_3d=None, output_batch_mpjpe=False):
    """joint_3d, gt: (B, J, 3); joints_vis_3d: (B, J, 1) of {0,1} or None."""
    B, J, C = joint_3d.shape
    assert C == 3
    has_vis = joints_vis_3d is not None
    want_masked = bool(output_batch_mpjpe)

    # Free (contiguous) reshapes only -- no transpose, no padding, no upcast.
    inputs = [joint_3d.reshape(B, 3 * J), gt.reshape(B, 3 * J)]
    if has_vis:
        inputs.append(joints_vis_3d.reshape(B, J))

    tb, gb = _choose_tiling(B, J, has_vis, want_masked)

    in_specs = [pl.BlockSpec((tb, 3 * J), lambda i: (i, 0)),
                pl.BlockSpec((tb, 3 * J), lambda i: (i, 0))]
    if has_vis:
        in_specs.append(pl.BlockSpec((tb, J), lambda i: (i, 0)))

    out_shapes, out_specs = [], []
    if want_masked:
        out_shapes.append(jax.ShapeDtypeStruct((B, J), jnp.float32))
        out_specs.append(pl.BlockSpec((tb, J), lambda i: (i, 0)))
    n_part = 2 if has_vis else 1
    out_shapes.append(jax.ShapeDtypeStruct((B, n_part), jnp.float32))
    out_specs.append(pl.BlockSpec((tb, n_part), lambda i: (i, 0)))

    outs = pl.pallas_call(
        _make_kernel(J, has_vis, want_masked),
        out_shape=tuple(out_shapes),
        grid=(gb,),
        in_specs=in_specs,
        out_specs=tuple(out_specs),
        compiler_params=pltpu.CompilerParams(
            dimension_semantics=("parallel",)),
    )(*inputs)

    if want_masked:
        masked, part = outs
    else:
        part = outs[0] if isinstance(outs, (tuple, list)) else outs

    msum = jnp.sum(part[:, 0])
    if has_vis:
        nsum = jnp.sum(part[:, 1])
    else:
        # vis == all ones -> each row has J valid joints (clamped to >= 1).
        nsum = jnp.asarray(float(B * max(J, 1)), dtype=jnp.float32)
    avg = msum / nsum

    if want_masked:
        return avg, masked, nsum
    return avg, nsum


def _reference(joint_3d, gt, vis):
    l2 = jnp.sqrt(jnp.sum((joint_3d - gt) ** 2, axis=2))
    v = vis.reshape(l2.shape)
    masked = l2 * v
    n_valid = jnp.sum(v, axis=1)
    n_valid = jnp.where(n_valid < 1.0, 1.0, n_valid)
    return jnp.sum(masked) / jnp.sum(n_valid), masked, jnp.sum(n_valid)


def _check(avg, masked, nsum, joint_3d, gt, vis, atol=1e-4):
    r_avg, r_masked, r_nsum = _reference(joint_3d, gt, vis)
    assert jnp.allclose(avg, r_avg, atol=atol), (avg, r_avg)
    if masked is not None:
        assert jnp.allclose(masked, r_masked, atol=atol)
    assert jnp.allclose(nsum, r_nsum, atol=atol), (nsum, r_nsum)


if __name__ == "__main__":
    key = jax.random.PRNGKey(0)
    k1, k2, k3, k4, k5, k6 = jax.random.split(key, 6)

    # --- small shape: B=2, J=8 (single full-batch block) -------------------
    B, J = 2, 8
    joint_3d = jax.random.normal(k1, (B, J, 3), dtype=jnp.float32)
    gt = jax.random.normal(k2, (B, J, 3), dtype=jnp.float32)
    vis = (jax.random.uniform(k3, (B, J, 1)) > 0.3).astype(jnp.float32)
    ones = jnp.ones((B, J, 1), jnp.float32)

    avg, masked, nsum = joint_mpjpe_loss(joint_3d, gt, vis, output_batch_mpjpe=True)
    jax.block_until_ready((avg, masked, nsum))
    _check(avg, masked, nsum, joint_3d, gt, vis)

    avg2, nsum2 = joint_mpjpe_loss(joint_3d, gt, vis)            # loss-only path
    _check(avg2, None, nsum2, joint_3d, gt, vis)

    avg3, nsum3 = joint_mpjpe_loss(joint_3d, gt)                  # vis=None fast path
    _check(avg3, None, nsum3, joint_3d, gt, ones)

    avg4, masked4, nsum4 = joint_mpjpe_loss(joint_3d, gt, output_batch_mpjpe=True)
    _check(avg4, masked4, nsum4, joint_3d, gt, ones)

    # --- larger shape: B=100, J=17 (2 grid steps, boundary overhang) -------
    B2, J2 = 100, 17
    joint_b = jax.random.normal(k4, (B2, J2, 3), dtype=jnp.float32)
    gt_b = jax.random.normal(k5, (B2, J2, 3), dtype=jnp.float32)
    vis_b = (jax.random.uniform(k6, (B2, J2, 1)) > 0.3).astype(jnp.float32)

    avg_b, nsum_b = joint_mpjpe_loss(joint_b, gt_b, vis_b)
    jax.block_until_ready((avg_b, nsum_b))
    _check(avg_b, None, nsum_b, joint_b, gt_b, vis_b)

    print("KERNEL_OK")
</pallas_src>

<mosaic_0001>
module attributes {stable_mosaic.version = 11 : i64} {
  func.func @kernel(%arg0: i32, %arg1: memref<2x24xf32, #tpu.memory_space<vmem>>, %arg2: memref<2x24xf32, #tpu.memory_space<vmem>>, %arg3: memref<2x8xf32, #tpu.memory_space<vmem>>, %arg4: memref<2x8xf32, #tpu.memory_space<vmem>>, %arg5: memref<2x2xf32, #tpu.memory_space<vmem>>) attributes {dimension_semantics = [#tpu.dimension_semantics<parallel>], iteration_bounds = array<i64: 1>, scalar_prefetch = 0 : i64, scratch_operands = 0 : i64, tpu.core_type = #tpu.core_type<tc>, window_params = [{transform_indices = @transform_0, window_bounds = array<i64: 2, 24>}, {transform_indices = @transform_1, window_bounds = array<i64: 2, 24>}, {transform_indices = @transform_2, window_bounds = array<i64: 2, 8>}, {transform_indices = @transform_3, window_bounds = array<i64: 2, 8>}, {transform_indices = @transform_4, window_bounds = array<i64: 2, 2>}]} {
    %c0 = arith.constant 0 : index
    %c0_0 = arith.constant 0 : index
    %0 = vector.load %arg1[%c0, %c0_0] : memref<2x24xf32, #tpu.memory_space<vmem>>, vector<2x24xf32>
    %c0_1 = arith.constant 0 : index
    %c0_2 = arith.constant 0 : index
    %1 = vector.load %arg2[%c0_1, %c0_2] : memref<2x24xf32, #tpu.memory_space<vmem>>, vector<2x24xf32>
    %2 = arith.subf %0, %1 : vector<2x24xf32>
    %3 = arith.mulf %2, %2 : vector<2x24xf32>
    %4 = tpu.iota {dimensions = array<i32: 0>} : vector<24x8xi32>
    %5 = tpu.iota {dimensions = array<i32: 1>} : vector<24x8xi32>
    %c3_i32 = arith.constant 3 : i32
    %6 = vector.broadcast %c3_i32 : i32 to vector<24x8xi32>
    %7 = arith.muli %5, %6 : vector<24x8xi32>
    %8 = arith.subi %4, %7 : vector<24x8xi32>
    %c0_i32 = arith.constant 0 : i32
    %9 = vector.broadcast %c0_i32 : i32 to vector<24x8xi32>
    %10 = arith.cmpi sge, %8, %9 : vector<24x8xi32>
    %c3_i32_3 = arith.constant 3 : i32
    %11 = vector.broadcast %c3_i32_3 : i32 to vector<24x8xi32>
    %12 = arith.cmpi slt, %8, %11 : vector<24x8xi32>
    %13 = arith.andi %10, %12 : vector<24x8xi1>
    %14 = arith.extui %13 : vector<24x8xi1> to vector<24x8xi32>
    %15 = arith.sitofp %14 : vector<24x8xi32> to vector<24x8xf32>
    %16 = arith.truncf %3 : vector<2x24xf32> to vector<2x24xbf16>
    %17 = arith.extf %16 : vector<2x24xbf16> to vector<2x24xf32>
    %18 = arith.subf %3, %17 : vector<2x24xf32>
    %cst = arith.constant dense<0.000000e+00> : vector<2x8xf32>
    %19 = tpu.matmul %17, %15, %cst {dimension_numbers = #tpu.dot_dimension_numbers<[1], [0], [0], [1], [0, 0, 1, 1], [], []>} : vector<2x24xf32>, vector<24x8xf32>, vector<2x8xf32> -> vector<2x8xf32>
    %cst_4 = arith.constant dense<0.000000e+00> : vector<2x8xf32>
    %20 = tpu.matmul %18, %15, %cst_4 {dimension_numbers = #tpu.dot_dimension_numbers<[1], [0], [0], [1], [0, 0, 1, 1], [], []>} : vector<2x24xf32>, vector<24x8xf32>, vector<2x8xf32> -> vector<2x8xf32>
    %21 = arith.addf %19, %20 : vector<2x8xf32>
    %22 = math.sqrt %21 : vector<2x8xf32>
    %c0_5 = arith.constant 0 : index
    %c0_6 = arith.constant 0 : index
    %23 = vector.load %arg3[%c0_5, %c0_6] : memref<2x8xf32, #tpu.memory_space<vmem>>, vector<2x8xf32>
    %24 = arith.mulf %22, %23 : vector<2x8xf32>
    %c0_7 = arith.constant 0 : index
    %c0_8 = arith.constant 0 : index
    %25 = vector.load %arg4[%c0_7, %c0_8] : memref<2x8xf32, #tpu.memory_space<vmem>>, vector<2x8xf32>
    tpu.vector_store %arg4[%c0_7, %c0_8], %24 {strides = array<i32>} : memref<2x8xf32, #tpu.memory_space<vmem>>, vector<2x8xf32>,
    %cst_9 = arith.constant dense<0.000000e+00> : vector<2xf32>
    %26 = vector.multi_reduction <add>, %24, %cst_9 [1] : vector<2x8xf32> to vector<2xf32>
    %27 = vector.shape_cast %26 : vector<2xf32> to vector<2x1xf32>
    %cst_10 = arith.constant dense<0.000000e+00> : vector<2xf32>
    %28 = vector.multi_reduction <add>, %23, %cst_10 [1] : vector<2x8xf32> to vector<2xf32>
    %29 = vector.shape_cast %28 : vector<2xf32> to vector<2x1xf32>
    %cst_11 = arith.constant 1.000000e+00 : f32
    %30 = vector.broadcast %cst_11 : f32 to vector<2x1xf32>
    %31 = arith.maximumf %29, %30 : vector<2x1xf32>
    %c0_12 = arith.constant 0 : index
    %c0_13 = arith.constant 0 : index
    %32 = vector.load %arg5[%c0_12, %c0_13] : memref<2x2xf32, #tpu.memory_space<vmem>>, vector<2x1xf32>
    tpu.vector_store %arg5[%c0_12, %c0_13], %27 {strides = array<i32>} : memref<2x2xf32, #tpu.memory_space<vmem>>, vector<2x1xf32>,
    %c0_14 = arith.constant 0 : index
    %c1 = arith.constant 1 : index
    %33 = vector.load %arg5[%c0_14, %c1] : memref<2x2xf32, #tpu.memory_space<vmem>>, vector<2x1xf32>
    tpu.vector_store %arg5[%c0_14, %c1], %31 {strides = array<i32>} : memref<2x2xf32, #tpu.memory_space<vmem>>, vector<2x1xf32>,
    return
  }
  func.func @transform_0(%arg0: i32) -> (i32, i32) {
    %c0_i32 = arith.constant 0 : i32
    %c0_i32_0 = arith.constant 0 : i32
    return %arg0, %c0_i32 : i32, i32
  }
  func.func @transform_1(%arg0: i32) -> (i32, i32) {
    %c0_i32 = arith.constant 0 : i32
    %c0_i32_0 = arith.constant 0 : i32
    return %arg0, %c0_i32 : i32, i32
  }
  func.func @transform_2(%arg0: i32) -> (i32, i32) {
    %c0_i32 = arith.constant 0 : i32
    %c0_i32_0 = arith.constant 0 : i32
    return %arg0, %c0_i32 : i32, i32
  }
  func.func @transform_3(%arg0: i32) -> (i32, i32) {
    %c0_i32 = arith.constant 0 : i32
    %c0_i32_0 = arith.constant 0 : i32
    return %arg0, %c0_i32 : i32, i32
  }
  func.func @transform_4(%arg0: i32) -> (i32, i32) {
    %c0_i32 = arith.constant 0 : i32
    %c0_i32_0 = arith.constant 0 : i32
    return %arg0, %c0_i32 : i32, i32
  }
}

</mosaic_0001>

<bundles_post_ra>
// kernel: joint_mpjpe_loss.1
= control target key start
LH: loop header
LB: loop body
LE: loop exit
PB: predicated region body
PF: predicated region fallthrough
CT: control target
= control target key end

     0   :  { %v21_v0 = vlaneseq  ;;  %v301_v2 = vmov 0.0   ;;  %s351_s0 = inlined_call_operand.vmem [shape: f32[2,24], index: 0, kind: input, shape index: {}]   ;;  %s352_s1 = inlined_call_operand.vmem [shape: f32[2,24], index: 1, kind: input, shape index: {}]   ;;  %s353_s2 = inlined_call_operand.vmem [shape: f32[2,8], index: 2, kind: input, shape index: {}]   ;;  %s354_s3 = inlined_call_operand.hbm [shape: f32[2,8], index: 3, kind: output, shape index: {0}]   ;;  %s355_s4 = inlined_call_operand.vmem [shape: f32[2,2], index: 4, kind: output, shape index: {1}]  }
   0x1   :  { %v17_v1 = vld [vmem:[%s351_s0] sm:$0x3]  ;;  %255 = vmatprep.subr.mxu0 %v301_v2  ;;  %264 = vmatprep.subr.mxu1 %v301_v2 }
   0x2   :  { %v18_v3 = vld [vmem:[%s352_s1] sm:$0x3] }
   0x3   :  { %10 = vsyncpa [#allocation3], 0  ;;  %v22_v4 = vshrl.u32 %v21_v0, 7  ;;  %v26_v5 = vand.u32 127, %v21_v0  ;;  %vm302_vm0 = vmmov 0   ;;  %v19_v6 = vsub.f32 %v17_v1, %v18_v3 }
   0x4   :  { %261 = vmatprep.mubr.msk.f32.mxu0 %vm302_vm0, %v301_v2  ;;  %270 = vmatprep.mubr.msk.f32.mxu1 %vm302_vm0, %v301_v2  ;;  %v303_v16 = vmov 1.0   ;;  %vm49_vm10 = vcmask 195584   ;;  %v203_v18 = vld [vmem:[%s353_s2] sm:$0x3]  ;;  %vm205_vm11 = vcmask 58368   ;;  %s304_s2 = smov [#allocation2]  }
   0x5   :  { %v24_v7 = vadd.s32 16, %v22_v4  ;;  %v27_v8 = vmul.u32 3, %v26_v5  ;;  %v23_v9 = vadd.s32 8, %v22_v4  ;;  %v20_v10 = vmul.f32 %v19_v6, %v19_v6  ;;  %s224_s19 = sshll.u32 %s304_s2, 4  ;;  %s225_s19 = int_to_ptr.vmem [resolvable:$true] %s224_s19 }
   0x6   :  { %v210_v19 = vsel %vm205_vm11, %v203_v18, 0.0  ;;  %s279_s20 = scalar_lea.vmem %s225_s19, 32  ;;  %p284_p1 = scmp.lt.s32.totalorder %s225_s19, %s225_s19 }
   0x7   :  { %v30_v11 = vsub.s32 %v24_v7, %v27_v8  ;;  %v29_v12 = vsub.s32 %v23_v9, %v27_v8  ;;  %v28_v13 = vsub.s32 %v22_v4, %v27_v8  ;;  %v46_v14 = vpack.c.bf16 %v20_v10, %v20_v10  ;;  %211 = vadd.xlane.f32.xlu0 %v210_v19  ;;  %p280_p0 = scmp.ne.s32.totalorder %s225_s19, %s279_s20  ;;  %p285_p2 = scmp.lt.s32.totalorder %s279_s20, %s279_s20 }
   0x9   :  { %vm33_vm1 = vcmp.ge.s32.totalorder %v30_v11, 0  ;;  %vm36_vm2 = vcmp.lt.s32.totalorder %v30_v11, 3  ;;  %vm32_vm3 = vcmp.ge.s32.totalorder %v29_v12, 0  ;;  %vm35_vm4 = vcmp.lt.s32.totalorder %v29_v12, 3  ;;  %p286_p3 = por %p285_p2, %p284_p1 }
   0xa   :  { %vm39_vm5 = vmand %vm33_vm1, %vm36_vm2  ;;  %vm31_vm6 = vcmp.ge.s32.totalorder %v28_v13, 0  ;;  %vm34_vm7 = vcmp.lt.s32.totalorder %v28_v13, 3  ;;  %v47_v15 = vunpack.c.l.bf16 %v46_v14 }
   0xb   :  { %256 = vmatpush3.msk.msra.mxu0 %vm39_vm5, %v303_v16  ;;  %265 = vmatpush3.msk.msra.mxu1 %vm39_vm5, %v303_v16  ;;  %vm38_vm8 = vmand %vm32_vm3, %vm35_vm4  ;;  %p287_p4 = pnand %p286_p3, %p280_p0 }
   0xc   :  { %257 = vmatprep.subr.mxu0 %v301_v2  ;;  %266 = vmatprep.subr.mxu1 %v301_v2  ;;  %vm37_vm9 = vmand %vm31_vm6, %vm34_vm7  ;;  %v48_v17 = vsub.f32 %v20_v10, %v47_v15 }
   0xd   :  { %258 = vmatpush3.msk.msra.mxu0 %vm38_vm8, %v303_v16  ;;  %267 = vmatpush3.msk.msra.mxu1 %vm38_vm8, %v303_v16 }
   0xe   :  { %259 = vmatprep.subr.mxu0 %v301_v2  ;;  %268 = vmatprep.subr.mxu1 %v301_v2 }
   0xf   :  { %260 = vmatpush3.msk.msra.mxu0 %vm37_vm9, %v303_v16  ;;  %269 = vmatpush3.msk.msra.mxu1 %vm37_vm9, %v303_v16 }
  0x10   :  { %262 = vmatmul.mubr.msk.f32.vlgmr.msra.gmra.mxu0 %vm49_vm10, %v48_v17  ;;  %271 = vmatmul.mubr.msk.f32.vlgmr.msra.gmra.mxu1 %vm49_vm10, %v47_v15 }
  0xd0   :  { %v119_v20 = vpop.f32.mrf.mxu0  ;;  %v192_v21 = vpop.f32.mrf.mxu1 }
  0xd1   :  { %v193_v22 = vadd.f32 %v192_v21, %v119_v20 }
  0xd2   :  { %v263_v23 = vpop.f32.mrf.mxu0  ;;  %v272_v24 = vpop.f32.mrf.mxu1 }
  0xd3   :  { %277 = vrsqrt.f32 %v193_v22  ;;  %vm198_vm12 = vcmp.eq.f32.partialorder %v193_v22, inf  ;;  %v201_v27 = vand.u32 2147483648, %v193_v22  ;;  %vm200_vm13 = vcmp.eq.f32.partialorder %v193_v22, 0.0 }
  0xe0   :  { %v278_v25 = vpop.eup %277 }
  0xe1   :  { %v197_v26 = vmul.f32 %v278_v25, %v193_v22 }
  0xe3   :  { %v199_v28 = vsel %vm198_vm12, %v193_v22, %v197_v26 }
  0xe4   :  { %v202_v29 = vsel %vm200_vm13, %v201_v27, %v199_v28 }
  0xe5   :  { %v204_v30 = vmul.f32 %v203_v18, %v202_v29 }
  0xe7   :  { %206 = vst.msk [vmem:[#allocation2] sm:$0x3] %vm205_vm11, %v204_v30  ;;  %v207_v31 = vsel %vm205_vm11, %v204_v30, 0.0 }
  0xe8   :  { %208 = vadd.xlane.f32.xlu0 %v207_v31 }
  0xe9   :  { %290 = shalt.err (!%p287_p4)
}
  0xea   :  { %227 = dma.vmem_to_hbm [thread:$0]  %s225_s19, 32, %s354_s3, [#allocation3]   ;;  %v212_v32 = vpop.xlane.xlu0 %211  ;;  %vm214_vm14 = vcmask 1024   ;;  %vm216_vm15 = vcmask 9224  }
  0xeb   :  { %v213_v33 = vmax.f32 %v212_v32, 1.0 }
 0x171   :  { %v209_v34 = vpop.xlane.xlu0 %208 }
 0x172   :  { %215 = vst.msk [vmem:[%s355_s4] sm:$0x3] %vm214_vm14, %v209_v34 }
 0x173   :  { %217 = vst.msk [vmem:[%s355_s4] sm:$0x3] %vm216_vm15, %v213_v33 }
 0x174   :  { %299 = dma.done.wait [#allocation3], 32  }
 0x175   :  { %300 = vsyncadd [#allocation3], 4294967264 }
 0x176   :  { %235 = vsyncpa [#allocation3], 1 }

</bundles_post_ra>
